<compile_context>
chip_gen: v7x
topology: tpu7x:2x2x1
jax: 0.10.0
libtpu: 0.0.40
codegen_flags: <defaults>
</compile_context>

<pallas_src>
import jax
import jax.numpy as jnp
from jax.experimental import pallas as pl
from jax.experimental.pallas import tpu as pltpu


def _round_up(v, m):
    return (v + m - 1) // m * m


def _pick_tm(hw, tm_max, min_steps=2, lane=128):
    """Pick the pixel-tile size TM (multiple of 128) for the Ho*Wo axis."""
    mp0 = _round_up(hw, lane)
    n = mp0 // lane
    t_cap = max(1, min(tm_max // lane, n))
    want_steps = min(min_steps, n)
    # Prefer an exact divisor of the 128-padded pixel count (no row padding and no
    # post-kernel slice on the hot path), as long as the tile stays reasonably large.
    for t in range(t_cap, max(t_cap // 4, 1) - 1, -1):
        if n % t == 0 and n // t >= want_steps:
            return t * lane, mp0
    # Otherwise take the largest tile giving >= want_steps and pad the pixel axis.
    t = max(1, min(t_cap, -(-n // want_steps)))
    return t * lane, _round_up(mp0, t * lane)


def _focus_kernel(x_ref, w_ref, b_ref, o_ref):
    # (Cout, K) @ (K, TM) on the MXU, f32 accumulation.  The output tile is
    # channel-major with the pixel axis lane-dense (TM is a multiple of 128),
    # so the store is unmasked and the final NCHW reshape outside is free.
    acc = jnp.dot(w_ref[...], x_ref[...], preferred_element_type=jnp.float32)
    acc = acc + b_ref[...]                                # folded-BN bias (Cout, 1) f32
    # Hardswish: x * relu6(x + 3) / 6  — pure VPU (add / clamp / two muls).
    o_ref[...] = (acc * jnp.clip(acc + 3.0, 0.0, 6.0) * (1.0 / 6.0)).astype(o_ref.dtype)


def focus_forward_pallas(x, weight, bn_gamma, bn_beta, bn_mean, bn_var, *,
                         eps=1e-5, compute_dtype=jnp.bfloat16, out_dtype=None,
                         tm_max=8192):
    """Focus forward: space-to-depth + 1x1 conv (no bias) + BN(eval) + Hardswish.

    x:      (N, Cin, H, W)  NCHW, H and W even
    weight: (Cout, 4*Cin, 1, 1)
    bn_*:   (Cout,) BatchNorm2d affine params / running stats (eval mode)

    Returns NCHW (N, Cout, H/2, W/2) in `out_dtype` (defaults to `compute_dtype`,
    i.e. bf16 on the fast path — pass out_dtype=jnp.float32 for f32 output).
    """
    N, Cin, H, W = x.shape
    assert H % 2 == 0 and W % 2 == 0, "Focus needs even spatial dims"
    Ho, Wo = H // 2, W // 2
    HoWo = Ho * Wo
    Cout, K_w, kh, kw = weight.shape
    K = 4 * Cin
    assert (K_w, kh, kw) == (K, 1, 1), "only the default k=1 Focus conv is supported"
    if out_dtype is None:
        out_dtype = compute_dtype

    # ---- fused space-to-depth relayout (one pass, already in compute dtype) ----
    # K axis ordered (c, ph, pw); pixel axis is ho*Wo + wo.
    xr = x.astype(compute_dtype).reshape(N, Cin, Ho, 2, Wo, 2)   # (N,c,ho,ph,wo,pw)
    patches = xr.transpose(0, 1, 3, 5, 2, 4).reshape(N, K, HoWo)  # (N, 4C, Ho*Wo)

    # ---- fold eval-mode BatchNorm into the (bias-free) 1x1 conv ----------------
    f32 = jnp.float32
    scale = bn_gamma.astype(f32) / jnp.sqrt(bn_var.astype(f32) + eps)           # (Cout,)
    # PyTorch concat order is k_old = (2*pw + ph)*Cin + c; permute the tiny weight
    # once to the kernel's (c, ph, pw) K ordering (free — done on the weight only).
    w_perm = weight.reshape(Cout, 2, 2, Cin).transpose(0, 3, 2, 1).reshape(Cout, K)
    w_mat = (w_perm.astype(f32) * scale[:, None]).astype(compute_dtype)          # (Cout, K)
    b_vec = (bn_beta.astype(f32) - bn_mean.astype(f32) * scale)[:, None]         # (Cout, 1)

    # ---- tiling / (minimal) padding --------------------------------------------
    TM, Mp = _pick_tm(HoWo, tm_max)
    kpack = 8 if jnp.dtype(compute_dtype).itemsize == 4 else 16   # sublane packing
    Kp = _round_up(K, kpack)
    if Kp > K or Mp > HoWo:
        # One combined pad; skipped entirely on aligned shapes (e.g. Cin=4, 640x640).
        patches = jnp.pad(patches, ((0, 0), (0, Kp - K), (0, Mp - HoWo)))
        w_mat = jnp.pad(w_mat, ((0, 0), (0, Kp - K)))

    in_isz = jnp.dtype(compute_dtype).itemsize
    out_isz = jnp.dtype(out_dtype).itemsize

    # Double-buffered per-step working set (x tile + out tile dominate).
    step_bytes = 2 * TM * (Kp * in_isz + Cout * out_isz)
    cparams = dict(dimension_semantics=("parallel", "parallel"))
    if step_bytes > 12 * 1024 * 1024:
        # Only triggered if tm_max is raised far past the default; keep comfortably
        # under v7x's 64 MiB physical VMEM while clearing v5e's 16 MiB scoped default.
        cparams["vmem_limit_bytes"] = int(min(2 * step_bytes, 48 * 1024 * 1024))

    cost = pl.CostEstimate(
        flops=2 * N * Mp * Kp * Cout + 4 * N * Mp * Cout,
        transcendentals=0,
        bytes_accessed=(N * Mp * Kp * in_isz + Cout * Kp * in_isz + Cout * 4
                        + N * Mp * Cout * out_isz))

    out = pl.pallas_call(
        _focus_kernel,
        out_shape=jax.ShapeDtypeStruct((N, Cout, Mp), out_dtype),
        grid_spec=pltpu.PrefetchScalarGridSpec(
            num_scalar_prefetch=0,
            grid=(N, Mp // TM),
            in_specs=[
                pl.BlockSpec((None, Kp, TM), lambda n, i: (n, 0, i)),   # patches (K, TM)
                pl.BlockSpec((Cout, Kp), lambda n, i: (0, 0)),          # folded weight
                pl.BlockSpec((Cout, 1), lambda n, i: (0, 0)),           # folded bias
            ],
            out_specs=pl.BlockSpec((None, Cout, TM), lambda n, i: (n, 0, i)),
        ),
        compiler_params=pltpu.CompilerParams(**cparams),
        cost_estimate=cost,
    )(patches, w_mat, b_vec)

    y = out if Mp == HoWo else out[:, :, :HoWo]
    return y.reshape(N, Cout, Ho, Wo)     # NCHW directly; contiguous view, no transpose


class FocusPallas:
    """Mirrors Focus(c1, c2): conv = Conv(4*c1, c2, k=1) = 1x1 conv + BN + Hardswish."""

    def __init__(self, weight, bn_gamma, bn_beta, bn_mean, bn_var, eps=1e-5,
                 compute_dtype=jnp.bfloat16, out_dtype=None, tm_max=8192):
        self.weight = weight
        self.bn_gamma = bn_gamma
        self.bn_beta = bn_beta
        self.bn_mean = bn_mean
        self.bn_var = bn_var
        self.eps = eps
        self.compute_dtype = compute_dtype
        self.out_dtype = out_dtype
        self.tm_max = tm_max

    def __call__(self, x):
        return focus_forward_pallas(
            x, self.weight, self.bn_gamma, self.bn_beta, self.bn_mean, self.bn_var,
            eps=self.eps, compute_dtype=self.compute_dtype, out_dtype=self.out_dtype,
            tm_max=self.tm_max)


def focus_ref(x, weight, bn_gamma, bn_beta, bn_mean, bn_var, eps=1e-5):
    """Plain-JAX f32 reference matching the PyTorch Focus forward (eval mode)."""
    x_cat = jnp.concatenate(
        [x[..., ::2, ::2], x[..., 1::2, ::2], x[..., ::2, 1::2], x[..., 1::2, 1::2]],
        axis=1)
    y = jax.lax.conv_general_dilated(
        x_cat, weight, (1, 1), "VALID",
        dimension_numbers=("NCHW", "OIHW", "NCHW"))
    scale = bn_gamma / jnp.sqrt(bn_var + eps)
    y = y * scale[None, :, None, None] + (bn_beta - bn_mean * scale)[None, :, None, None]
    return y * jnp.clip(y + 3.0, 0.0, 6.0) / 6.0


if __name__ == "__main__":
    key = jax.random.PRNGKey(0)

    def make_params(k, cin, cout):
        k_w, k_g, k_b, k_m, k_v = jax.random.split(k, 5)
        weight = jax.random.normal(k_w, (cout, 4 * cin, 1, 1), dtype=jnp.float32) * 0.1
        bn_gamma = 1.0 + 0.2 * jax.random.normal(k_g, (cout,), dtype=jnp.float32)
        bn_beta = 0.1 * jax.random.normal(k_b, (cout,), dtype=jnp.float32)
        bn_mean = 0.1 * jax.random.normal(k_m, (cout,), dtype=jnp.float32)
        bn_var = 1.0 + 0.2 * jax.random.uniform(k_v, (cout,), dtype=jnp.float32)
        return weight, bn_gamma, bn_beta, bn_mean, bn_var

    k1, k2, kx1, kx2 = jax.random.split(key, 4)

    # --- case A: aligned channels (K = 16 exactly), small image ------------------
    N, Cin, H, W, Cout = 2, 4, 16, 16, 8
    x = jax.random.normal(kx1, (N, Cin, H, W), dtype=jnp.float32)
    params = make_params(k1, Cin, Cout)
    ref = focus_ref(x, *params)

    y32 = jax.block_until_ready(
        focus_forward_pallas(x, *params, compute_dtype=jnp.float32))
    assert y32.shape == (N, Cout, H // 2, W // 2)
    assert jnp.allclose(y32, ref, atol=5e-3, rtol=5e-3), "f32 path mismatch (case A)"

    y16 = jax.block_until_ready(FocusPallas(*params)(x))
    assert y16.shape == (N, Cout, H // 2, W // 2)
    assert jnp.allclose(y16.astype(jnp.float32), ref, atol=3e-2, rtol=3e-2), \
        "bf16 path mismatch (case A)"

    # --- case B: YOLOv5-like Cin=3 (K=12 -> padded to 16), non-aligned Ho*Wo ------
    N, Cin, H, W, Cout = 1, 3, 20, 20, 24
    x = jax.random.normal(kx2, (N, Cin, H, W), dtype=jnp.float32)
    params = make_params(k2, Cin, Cout)
    ref = focus_ref(x, *params)

    y32 = jax.block_until_ready(
        focus_forward_pallas(x, *params, compute_dtype=jnp.float32))
    assert y32.shape == (N, Cout, H // 2, W // 2)
    assert jnp.allclose(y32, ref, atol=5e-3, rtol=5e-3), "f32 path mismatch (case B)"

    y16 = jax.block_until_ready(FocusPallas(*params)(x))
    assert y16.shape == (N, Cout, H // 2, W // 2)
    assert jnp.allclose(y16.astype(jnp.float32), ref, atol=3e-2, rtol=3e-2), \
        "bf16 path mismatch (case B)"

    print("KERNEL_OK")
</pallas_src>

<mosaic_0001>
module attributes {stable_mosaic.version = 11 : i64} {
  func.func @_focus_kernel(%arg0: i32, %arg1: i32, %arg2: memref<1x16x128xf32, #tpu.memory_space<vmem>>, %arg3: memref<8x16xf32, #tpu.memory_space<vmem>>, %arg4: memref<8x1xf32, #tpu.memory_space<vmem>>, %arg5: memref<1x8x128xf32, #tpu.memory_space<vmem>>) attributes {dimension_semantics = [#tpu.dimension_semantics<parallel>, #tpu.dimension_semantics<parallel>], iteration_bounds = array<i64: 2, 1>, scalar_prefetch = 0 : i64, scratch_operands = 0 : i64, tpu.core_type = #tpu.core_type<tc>, window_params = [{transform_indices = @transform_0, window_bounds = array<i64: 1, 16, 128>}, {pipeline_mode = #tpu.pipeline_mode<synchronous>, transform_indices = @transform_1, window_bounds = array<i64: 8, 16>}, {pipeline_mode = #tpu.pipeline_mode<synchronous>, transform_indices = @transform_2, window_bounds = array<i64: 8, 1>}, {transform_indices = @transform_3, window_bounds = array<i64: 1, 8, 128>}]} {
    %c0 = arith.constant 0 : index
    %c0_0 = arith.constant 0 : index
    %0 = vector.load %arg3[%c0, %c0_0] : memref<8x16xf32, #tpu.memory_space<vmem>>, vector<8x16xf32>
    %c0_1 = arith.constant 0 : index
    %c0_2 = arith.constant 0 : index
    %c0_3 = arith.constant 0 : index
    %1 = vector.load %arg2[%c0_1, %c0_2, %c0_3] : memref<1x16x128xf32, #tpu.memory_space<vmem>>, vector<1x16x128xf32>
    %2 = vector.shape_cast %1 : vector<1x16x128xf32> to vector<16x128xf32>
    %cst = arith.constant dense<0.000000e+00> : vector<8x128xf32>
    %3 = tpu.matmul %0, %2, %cst {dimension_numbers = #tpu.dot_dimension_numbers<[1], [0], [0], [1], [0, 0, 1, 1], [], []>} : vector<8x16xf32>, vector<16x128xf32>, vector<8x128xf32> -> vector<8x128xf32>
    %c0_4 = arith.constant 0 : index
    %c0_5 = arith.constant 0 : index
    %4 = vector.load %arg4[%c0_4, %c0_5] : memref<8x1xf32, #tpu.memory_space<vmem>>, vector<8x1xf32>
    %5 = vector.broadcast %4 : vector<8x1xf32> to vector<8x128xf32>
    %6 = arith.addf %3, %5 : vector<8x128xf32>
    %cst_6 = arith.constant 3.000000e+00 : f32
    %7 = vector.broadcast %cst_6 : f32 to vector<8x128xf32>
    %8 = arith.addf %6, %7 : vector<8x128xf32>
    %cst_7 = arith.constant 0.000000e+00 : f32
    %cst_8 = arith.constant 6.000000e+00 : f32
    %9 = vector.broadcast %cst_7 : f32 to vector<8x128xf32>
    %10 = arith.maximumf %9, %8 : vector<8x128xf32>
    %11 = vector.broadcast %cst_8 : f32 to vector<8x128xf32>
    %12 = arith.minimumf %11, %10 : vector<8x128xf32>
    %13 = arith.mulf %6, %12 : vector<8x128xf32>
    %cst_9 = arith.constant 0.166666672 : f32
    %14 = vector.broadcast %cst_9 : f32 to vector<8x128xf32>
    %15 = arith.mulf %13, %14 : vector<8x128xf32>
    %c0_10 = arith.constant 0 : index
    %c0_11 = arith.constant 0 : index
    %c0_12 = arith.constant 0 : index
    %16 = vector.load %arg5[%c0_10, %c0_11, %c0_12] : memref<1x8x128xf32, #tpu.memory_space<vmem>>, vector<1x8x128xf32>
    %17 = vector.shape_cast %16 : vector<1x8x128xf32> to vector<8x128xf32>
    %18 = vector.shape_cast %15 : vector<8x128xf32> to vector<1x8x128xf32>
    tpu.vector_store %arg5[%c0_10, %c0_11, %c0_12], %18 {strides = array<i32>} : memref<1x8x128xf32, #tpu.memory_space<vmem>>, vector<1x8x128xf32>,
    return
  }
  func.func @transform_0(%arg0: i32, %arg1: i32) -> (i32, i32, i32) {
    %c0_i32 = arith.constant 0 : i32
    %c0_i32_0 = arith.constant 0 : i32
    return %arg0, %c0_i32, %arg1 : i32, i32, i32
  }
  func.func @transform_1(%arg0: i32, %arg1: i32) -> (i32, i32) {
    %c0_i32 = arith.constant 0 : i32
    %c0_i32_0 = arith.constant 0 : i32
    %c0_i32_1 = arith.constant 0 : i32
    return %c0_i32, %c0_i32_0 : i32, i32
  }
  func.func @transform_2(%arg0: i32, %arg1: i32) -> (i32, i32) {
    %c0_i32 = arith.constant 0 : i32
    %c0_i32_0 = arith.constant 0 : i32
    %c0_i32_1 = arith.constant 0 : i32
    return %c0_i32, %c0_i32_0 : i32, i32
  }
  func.func @transform_3(%arg0: i32, %arg1: i32) -> (i32, i32, i32) {
    %c0_i32 = arith.constant 0 : i32
    %c0_i32_0 = arith.constant 0 : i32
    return %arg0, %c0_i32, %arg1 : i32, i32, i32
  }
}

</mosaic_0001>

<bundles_post_ra>
// kernel: tpu_custom_call.1
= control target key start
LH: loop header
LB: loop body
LE: loop exit
PB: predicated region body
PF: predicated region fallthrough
CT: control target
= control target key end

     0   :  { %8 = vsyncpa [#allocation3], 0  ;;  %s811_s0 = inlined_call_operand.hbm [shape: f32[2,16,128], index: 0, kind: input, shape index: {}]   ;;  %s812_s1 = inlined_call_operand.vmem [shape: f32[8,16], index: 1, kind: input, shape index: {}]   ;;  %s813_s2 = inlined_call_operand.vmem [shape: f32[8,1], index: 2, kind: input, shape index: {}]   ;;  %s814_s3 = inlined_call_operand.hbm [shape: f32[2,8,128], index: 3, kind: output, shape index: {}]  }
   0x1   :  { %10 = vsyncpa [#allocation3 + $0x1], 0 }
   0x2   :  { %11 = vsyncpa [#allocation4], 0 }
   0x3   :  { %13 = vsyncpa [#allocation4 + $0x1], 0  ;;  %s631_s12 = smov 0   ;;  %s633_s13 = smov 0  }
   0x4   :  { %s635_s14 = smov 0   ;;  %s637_s15 = smov 0  }
   0x5   :  { %s639_s16 = smov 0   ;;  %s641_s17 = smov 0  }
   0x6 LB: > { %s391_s18 = sadd.s32 4294967295, %s601_s17   ;;  %s392_s19 = sadd.s32 4294967294, %s601_s17   ;;  %s601_s17 = sphi %s641_s17, %s19_s17   ;;  %s597_s16 = sphi %s639_s16, %s829_s16   ;;  %s593_s15 = sphi %s637_s15, %s828_s15   ;;  %s589_s14 = sphi %s635_s14, %s827_s14   ;;  %s585_s13 = sphi %s633_s13, %s826_s13   ;;  %s581_s12 = sphi %s631_s12, %s825_s12  }
   0x7   : > { %s31_s20 = sadd.s32 1, %s597_s16  ;;  %s40_s21 = sadd.s32 1, %s589_s14 }
   0x8   : > { %p33_p0 = scmp.ge.s32.totalorder %s31_s20, 2  ;;  %p47_p1 = scmp.ne.s32.totalorder %s589_s14, %s585_s13 }
   0x9   : > { %p48_p2 = scmp.eq.s32.totalorder %s601_s17, 0  ;;  %p53_p3 = scmp.ne.s32.totalorder %s585_s13, %s581_s12 }
   0xa   : > { %s831_s20 = smov (%p33_p0, %s31_s20), 0  ;;  %p54_p5 = scmp.eq.s32.totalorder %s391_s18, 0 }
   0xb   : > { %p672_p4 = por %p48_p2, %p47_p1  ;;  %s35_s23 = ssub.s32 %s597_s16, %s831_s20 }
   0xc   : > { %p121_p6 = scmp.eq.s32.totalorder %s391_s18, 1  ;;  %p38_p7 = scmp.eq.s32.totalorder %s35_s23, 0 }
   0xd   : > { %p678_p8 = por %p54_p5, %p53_p3  ;;  %p127_p10 = scmp.eq.s32.totalorder %s392_s19, 1 }
   0xe   : > { %p682_p9 = por %p121_p6, %p47_p1  ;;  %p432_p13 = scmp.lt.s32.totalorder %s601_s17, 2 }
   0xf   : > { %s687_s26 = scalar_select %p38_p7, %s589_s14, %s40_s21  }
  0x10   : > { %s818_s25 = scalar_select %p682_p9, 1, 0 }
  0x11   : > { %p689_p11 = por %p127_p10, %p53_p3  ;;  %s153_s28 = sand.u32 1, %s589_s14  }
  0x12   : > { %s395_s29 = sshll.u32 %s153_s28, 4  ;;  %s406_s30 = sshll.u32 %s597_s16, 8 }
  0x13   : > { %s819_s27 = scalar_select %p689_p11, 1, 0 }
  0x14   : > { %s700_s6 = scalar_lea.hbm %s811_s0, %s406_s30  ;;  %s157_s7 = scalar_lea.vmem [#allocation2], %s395_s29 }
  0x15   : > { %s165_s8 = sshll.u32 %s157_s7, 4  ;;  %p706_p0 = pnand %p432_p13, %p672_p4  ;;  %s702_s8 = int_to_ptr.vmem [resolvable:$true] %s165_s8 }
  0x16   : > { %s711_s10 = scalar_lea.sflag [#allocation3], %s153_s28  ;;  %s489_s11 = scalar_lea.hbm %s700_s6, 256 }
  0x17   : > { %p490_p2 = scmp.ne.s32.totalorder %s700_s6, %s489_s11  ;;  %p491_p3 = pneg %p706_p0 }
  0x18   : > { %s494_s21 = scalar_lea.hbm %s811_s0, 512  ;;  %p495_p4 = scmp.lt.u32.totalorder %s700_s6, %s811_s0 }
  0x19   : > { %p492_p5 = pnand %p491_p3, %p490_p2  ;;  %p496_p7 = scmp.lt.u32.totalorder %s494_s21, %s489_s11 }
  0x1a   : > { %p498_p13 = scmp.lt.u32.totalorder %s489_s11, %s700_s6 }
  0x1b   : > { %p493_p6 = pneg %p492_p5  ;;  %p497_p10 = por %p496_p7, %p495_p4 }
  0x1d   : > { %p499_p12 = por %p498_p13, %p497_p10 }
  0x1f   : > { %p500_p1 = pnand %p499_p12, %p493_p6 }
  0x21   : > { %503 = shalt.err (!%p500_p1)
}
  0x22   : > { %s504_s28 = scalar_lea.vmem %s702_s8, 256  ;;  %s603_s29 = smov [#allocation2]  }
  0x23   : > { %p505_p2 = scmp.ne.s32.totalorder %s702_s8, %s504_s28  ;;  %s509_s30 = sshll.u32 %s603_s29, 4  ;;  %s510_s30 = int_to_ptr.vmem [resolvable:$false] %s509_s30 }
  0x24   : > { %s511_s4 = scalar_lea.vmem %s510_s30, 512  ;;  %p512_p9 = scmp.lt.s32.totalorder %s702_s8, %s510_s30 }
  0x25   : > { %p507_p5 = pnand %p505_p2, %p491_p3  ;;  %p513_p4 = scmp.lt.s32.totalorder %s511_s4, %s504_s28 }
  0x27   : > { %p508_p11 = pneg %p507_p5  ;;  %p514_p7 = por %p513_p4, %p512_p9 }
  0x29   : > { %p515_p10 = pnand %p514_p7, %p508_p11 }
  0x2b   : > { %518 = shalt.err (!%p515_p10)
}
  0x2c   : > { %s604_s5 = smov 128   ;;  %s605_s7 = smov 8  }
  0x2d   : > { %427 = dma.hbm_to_vmem [thread:$0]  (!%p706_p0), %s700_s6, 256, %s702_s8, %s711_s10, %s604_s5, %s604_s5, %s605_s7  }
  0x2e   : > { %p173_p12 = scmp.lt.s32.totalorder %s601_s17, 3  ;;  %p821_p1 = scmp.ge.s32.totalorder %s601_s17, 1 }
  0x30   : > { %p174_p3 = pnand %p821_p1, %p173_p12 }
  0x31   : > { %s743_s11 = sand.u32 (!%p174_p3), 1, %s585_s13  }
  0x32   : > { %177 = sbr.rel (%p174_p3) target bundleno = 303 (0x12f), region = 32  ;;  %s399_s18 = sshll.u32 (!%p174_p3), %s743_s11, 4 }
  0x33   : > { %s180_s19 = scalar_lea.sflag (!%p174_p3), [#allocation3], %s743_s11  ;;  %s183_s21 = scalar_lea.vmem (!%p174_p3), [#allocation2], %s399_s18 }
  0x39   : > { %572 = dma.done.wait (%p678_p8), %s180_s19, 256  }
  0x3a   : > { %574 = vsyncadd (%p678_p8), %s180_s19, 4294967040  ;;  %v606_v0 = vmov 0.0|0.0   ;;  %vm607_vm0 = vmmov 0   ;;  %v608_v1 = vmov 0.0   ;;  %v609_v2 = vmov 0   ;;  %v207_v3 = vld [vmem:[%s183_s21] sm:$0xff] }
  0x3b   : > { %417 = vmatprep.subr.bf16.mxu0 %v606_v0  ;;  %414 = vmatprep.mubr.msk.f32.mxu0 %vm607_vm0, %v608_v1  ;;  %v208_v4 = vld [vmem:[%s183_s21 + $0x8] sm:$0xff]  ;;  %v209_v6 = vld [vmem:[%s813_s2] sm:$0xff]  ;;  %vm215_vm1 = vcmask 130048   ;;  %s400_s10 = sshll.u32 %s743_s11, 3  ;;  %s403_s22 = sshll.u32 %s593_s15, 7 }
  0x3c   : > { %488 = vset.pattern.permute.xlu0 %v609_v2  ;;  %v418_v5 = vpack.c.bf16 %v208_v4, %v207_v3  ;;  %v206_v7 = vld [vmem:[%s812_s1] sm:$0xff]  ;;  %s205_s23 = scalar_lea.vmem [#allocation5], %s400_s10  ;;  %s762_s4 = scalar_lea.hbm %s814_s3, %s403_s22 }
  0x3d   : > { %212 = vperm.xlu0 %488, %v209_v6   ;;  %s310_s28 = sshll.u32 %s205_s23, 4  ;;  %s296_s5 = scalar_lea.sflag [#allocation4], %s743_s11  ;;  %s764_s28 = int_to_ptr.vmem [resolvable:$true] %s310_s28 }
  0x3e   : > { %419 = vmatpush3.bf16.msra.mxu0 %v418_v5  ;;  %s519_s7 = scalar_lea.vmem %s764_s28, 128  ;;  %p822_p9 = scmp.ne.s32.totalorder %s818_s25, 0 }
  0x3f   : > { %p520_p8 = scmp.ne.s32.totalorder %s764_s28, %s519_s7  ;;  %s610_s15 = smov [#allocation5]  }
  0x40   : > { %s523_s18 = sshll.u32 %s610_s15, 4  ;;  %s524_s18 = int_to_ptr.vmem [resolvable:$false] %s523_s18 }
  0x41   : > { %415 = vmatmul.mubr.msk.f32.vlgmr.msra.gmra.mrb[0].mxu0 %vm215_vm1, %v206_v7  ;;  %p521_p11 = pnand %p520_p8, %p822_p9  ;;  %s525_s19 = scalar_lea.vmem %s524_s18, 256 }
  0x42   : > { %p526_p6 = scmp.lt.s32.totalorder %s764_s28, %s524_s18  ;;  %p527_p13 = scmp.lt.s32.totalorder %s525_s19, %s519_s7 }
  0x43   : > { %p522_p0 = pneg %p521_p11 }
  0x44   : > { %p528_p2 = por %p527_p13, %p526_p6 }
  0x46   : > { %p529_p5 = pnand %p528_p2, %p522_p0 }
  0xbc   : > { %v213_v8 = vpop.permute.xlu0 %212 }
 0x114   : > { %v285_v9 = vpop.f32.mrb[0].mxu0 }
 0x115   : > { %v286_v10 = vadd.f32 %v285_v9, %v213_v8  ;;  %v416_v11 = vpop.f32.mrb[1].mxu0 }
 0x117   : > { %v289_v12 = vadd.f32 3.0, %v286_v10 }
 0x119   : > { %v290_v13 = vmax.f32 %v289_v12, 0.0 }
 0x11b   : > { %v291_v14 = vmin.f32 %v290_v13, 6.0 }
 0x11d   : > { %v292_v15 = vmul.f32 %v291_v14, %v286_v10 }
 0x11f   : > { %v293_v16 = vmul.f32 0.16666667, %v292_v15 }
 0x121   : > { %294 = vst [vmem:[%s205_s23] sm:$0xff] %v293_v16 }
 0x122   : > { %532 = shalt.err (!%p529_p5)
}
 0x123   : > { %s533_s11 = scalar_lea.hbm %s762_s4, 128  ;;  %s537_s8 = scalar_lea.hbm %s814_s3, 256 }
 0x124   : > { %p534_p4 = scmp.ne.s32.totalorder %s762_s4, %s533_s11  ;;  %p538_p12 = scmp.lt.u32.totalorder %s762_s4, %s814_s3 }
 0x125   : > { %p539_p1 = scmp.lt.u32.totalorder %s537_s8, %s533_s11  ;;  %p541_p8 = scmp.lt.u32.totalorder %s533_s11, %s762_s4 }
 0x126   : > { %p535_p7 = pnand %p534_p4, %p822_p9 }
 0x127   : > { %p540_p3 = por %p539_p1, %p538_p12 }
 0x128   : > { %p536_p10 = pneg %p535_p7 }
 0x129   : > { %p542_p11 = por %p541_p8, %p540_p3 }
 0x12b   : > { %p543_p0 = pnand %p542_p11, %p536_p10 }
 0x12d   : > { %546 = shalt.err (!%p543_p0)
}
 0x12e   : > { %422 = dma.vmem_to_hbm [thread:$0]  (%p822_p9), %s764_s28, 128, %s762_s4, %s296_s5  }
 0x12f PF: > { %s322_s10 = sand.u32 1, %s581_s12   ;;  %p823_p6 = scmp.ne.s32.totalorder %s819_s27, 0 }
 0x130   : > { %p824_p13 = scmp.ge.s32.totalorder %s601_s17, 2  ;;  %s323_s22 = scalar_lea.sflag [#allocation4], %s322_s10 }
 0x132   : > { %p429_p2 = pnand %p824_p13, %p823_p6 }
 0x134   : > { %576 = dma.done.wait (!%p429_p2), %s323_s22, 128  }
 0x135   : > { %578 = vsyncadd (!%p429_p2), %s323_s22, 4294967168  ;;  %s19_s17 = sadd.s32 1, %s601_s17   ;;  %s825_s12 = smov %s585_s13 }
 0x136   : > { %p16_p5 = scmp.ge.s32.totalorder %s19_s17, 4   ;;  %s826_s13 = smov %s589_s14 }
 0x137   : > { %s827_s14 = smov %s687_s26  ;;  %s828_s15 = smov %s597_s16 }
 0x138   : > { %s829_s16 = smov %s831_s20  ;;  %18 = sbr.rel (!%p16_p5) target bundleno = 6 (0x6), region = 77 }
 0x13f   :  { %328 = vsyncpa [#allocation3], 1 }
 0x140   :  { %330 = vsyncpa [#allocation3 + $0x1], 1 }
 0x141   :  { %331 = vsyncpa [#allocation4], 1 }
 0x142   :  { %333 = vsyncpa [#allocation4 + $0x1], 1 }

</bundles_post_ra>
